<compile_context>
chip_gen: v7x
topology: tpu7x:2x2x1
jax: 0.10.0
libtpu: 0.0.40
codegen_flags: <defaults>
</compile_context>

<pallas_src>
import jax
import jax.numpy as jnp
from jax import lax
from jax.experimental import pallas as pl
from jax.experimental.pallas import tpu as pltpu


def _round_up(n, m):
    return ((n + m - 1) // m) * m


def _pick_tile(batch, max_tile=2048):
    """Batch-tile rows per grid step.

    * batch < 256  -> one step covering the whole (sublane-aligned) batch.
    * otherwise    -> an even number (>= 2) of steps of <= max_tile rows each
                      (both v7x TensorCores busy), tile a multiple of 128 so
                      the lane-dense [1, tile] output block is legal.
    """
    if batch < 256:
        return _round_up(batch, 8)
    n_steps = max(2, pl.cdiv(batch, max_tile))
    if n_steps % 2:
        n_steps += 1
    return _round_up(pl.cdiv(batch, n_steps), 128)


def qnet_kernel(s_ref, a_ref, w1s_ref, w1a_ref, b1_ref, w2_ref, b2_ref,
                w3_ref, b3_ref, o_ref):
    bf16 = jnp.bfloat16
    f32 = jnp.float32

    # Layer 1: fused "concat" -> two MXU matmuls sharing the f32 accumulator.
    # astype is a no-op if the caller already supplies bf16 inputs.
    s = s_ref[...].astype(bf16)                                   # [TB, S]
    a = a_ref[...].astype(bf16)                                   # [TB, A]
    h1 = jnp.dot(s, w1s_ref[...], preferred_element_type=f32)
    h1 = h1 + jnp.dot(a, w1a_ref[...], preferred_element_type=f32)
    h1 = jnp.maximum(h1 + b1_ref[...], 0.0)                       # f32 [TB, 256]

    # Layer 2: K = N = 256 — exactly one 256x256 MXU tile on v6e/v7x.
    h2 = jnp.dot(h1.astype(bf16), w2_ref[...], preferred_element_type=f32)
    h2 = jnp.maximum(h2 + b2_ref[...], 0.0)                       # f32 [TB, 256]

    # Layer 3: [1,256] x [TB,256] contraction on both operands' last dims
    # (standard trans_b matmul -> transposed MXU weight push), producing a
    # lane-dense [1, TB] row; avoids an N=1 MXU column and masked lane stores.
    # TODO(synk): confirm via pl.lower_as_mlir that Mosaic does not insert a
    # full vxpose of h2 here; if it does, fall back to a VPU multiply +
    # jnp.sum(axis=-1) (XLU reduce) per the perf review.
    q = lax.dot_general(
        w3_ref[...], h2.astype(bf16),
        dimension_numbers=(((1,), (1,)), ((), ())),
        preferred_element_type=f32)                               # [1, TB]
    o_ref[...] = q + b3_ref[0, 0]


def qnet_forward(states, actions, params, *, max_tile=2048):
    """states: [B, state_size], actions: [B, action_size] -> q: [B].

    Inputs are consumed in the caller's dtype (bf16 halves the input DMA);
    the kernel casts to bf16 for the MXU and accumulates in f32.
    """
    w1s, w1a, b1, w2, b2, w3, b3 = params
    B, S = states.shape
    A = actions.shape[1]
    H = w2.shape[0]

    tb = _pick_tile(B, max_tile)
    num_tiles = pl.cdiv(B, tb)
    b_out = num_tiles * tb          # only the tiny output row is over-allocated

    flops = 2 * b_out * ((S + A) * H + H * H + H)
    bytes_accessed = (
        (w1s.size + w1a.size + w2.size + w3.size) * 2            # bf16 weights
        + (b1.size + b2.size + b3.size) * 4                      # f32 biases
        + states.size * states.dtype.itemsize                    # inputs as-is
        + actions.size * actions.dtype.itemsize
        + b_out * 4)                                             # f32 output row
    cost = pl.CostEstimate(flops=flops, transcendentals=0,
                           bytes_accessed=bytes_accessed)

    out = pl.pallas_call(
        qnet_kernel,
        out_shape=jax.ShapeDtypeStruct((1, b_out), jnp.float32),
        grid=(num_tiles,),
        in_specs=[
            pl.BlockSpec((tb, S), lambda i: (i, 0)),          # states tile
            pl.BlockSpec((tb, A), lambda i: (i, 0)),          # actions tile
            pl.BlockSpec(w1s.shape, lambda i: (0, 0)),        # weights stay
            pl.BlockSpec(w1a.shape, lambda i: (0, 0)),        # VMEM-resident
            pl.BlockSpec(b1.shape, lambda i: (0, 0)),         # across batch
            pl.BlockSpec(w2.shape, lambda i: (0, 0)),         # tiles
            pl.BlockSpec(b2.shape, lambda i: (0, 0)),
            pl.BlockSpec(w3.shape, lambda i: (0, 0)),
            pl.BlockSpec(memory_space=pltpu.MemorySpace.SMEM),  # b3 scalar
        ],
        out_specs=pl.BlockSpec((1, tb), lambda i: (0, i)),    # lane-dense row
        compiler_params=pltpu.CompilerParams(
            dimension_semantics=("parallel",),                # megacore on v7x
            vmem_limit_bytes=32 * 1024 * 1024),               # v5e headroom
        cost_estimate=cost,
    )(states, actions, w1s, w1a, b1, w2, b2, w3, b3)

    return out[0, :B]  # squeeze(-1), drop batch padding
    # TODO(synk): for a SAC twin critic, stack Q1/Q2 weights (extra head grid
    # axis) and fuse both heads into one pallas_call to reuse the input DMA
    # and launch/per-step overhead.


def init_qnet_params(key, state_size, action_size, hidden=256):
    """Deterministic init mimicking torch.nn.Linear default (U[-1/sqrt(fan_in), +]).

    Storage layout (kernel-friendly):
      w1_s [S, H] bf16, w1_a [A, H] bf16, b1 [1, H] f32,
      w2   [H, H] bf16,                   b2 [1, H] f32,
      w3   [1, H] bf16,                   b3 [1, 1] f32.
    """
    d_in = state_size + action_size
    k1, k2, k3 = jax.random.split(key, 3)

    def linear(k, fan_in, fan_out):
        kw, kb = jax.random.split(k)
        bound = 1.0 / (fan_in ** 0.5)
        w = jax.random.uniform(kw, (fan_in, fan_out), jnp.float32, -bound, bound)
        b = jax.random.uniform(kb, (1, fan_out), jnp.float32, -bound, bound)
        return w, b

    w1, b1 = linear(k1, d_in, hidden)
    w2, b2 = linear(k2, hidden, hidden)
    w3, b3 = linear(k3, hidden, 1)

    bf16 = jnp.bfloat16
    return (w1[:state_size].astype(bf16),      # W1_s
            w1[state_size:].astype(bf16),      # W1_a
            b1,
            w2.astype(bf16), b2,
            w3.T.astype(bf16),                 # stored as [1, hidden]
            b3.reshape(1, 1))


def qnet_reference(states, actions, params):
    """Pure-JAX reference mirroring the kernel's numerics (bf16 MXU inputs, f32 accum)."""
    w1s, w1a, b1, w2, b2, w3, b3 = params
    bf16, f32 = jnp.bfloat16, jnp.float32
    h1 = jnp.maximum(
        jnp.dot(states.astype(bf16), w1s, preferred_element_type=f32)
        + jnp.dot(actions.astype(bf16), w1a, preferred_element_type=f32)
        + b1, 0.0)
    h2 = jnp.maximum(
        jnp.dot(h1.astype(bf16), w2, preferred_element_type=f32) + b2, 0.0)
    q = jnp.dot(h2.astype(bf16), w3.T, preferred_element_type=f32)[:, 0] + b3[0, 0]
    return q


if __name__ == "__main__":
    key = jax.random.PRNGKey(0)
    k_params, k_s, k_a, k_s2, k_a2 = jax.random.split(key, 5)

    state_size, action_size = 16, 8
    params = init_qnet_params(k_params, state_size, action_size)

    # Small single-tile case (whole batch in one grid step).
    batch = 8
    states = jax.random.normal(k_s, (batch, state_size), jnp.float32)
    actions = jax.random.normal(k_a, (batch, action_size), jnp.float32)
    q = qnet_forward(states, actions, params)
    jax.block_until_ready(q)
    q_ref = qnet_reference(states, actions, params)
    assert q.shape == (batch,), q.shape
    assert jnp.allclose(q, q_ref, atol=2e-3, rtol=2e-3), (q, q_ref)

    # Multi-tile case with a ragged last block (no wrapper-side padding).
    batch2 = 300
    states2 = jax.random.normal(k_s2, (batch2, state_size), jnp.float32)
    actions2 = jax.random.normal(k_a2, (batch2, action_size), jnp.float32)
    q2 = qnet_forward(states2, actions2, params)
    jax.block_until_ready(q2)
    q2_ref = qnet_reference(states2, actions2, params)
    assert q2.shape == (batch2,), q2.shape
    assert jnp.allclose(q2, q2_ref, atol=2e-3, rtol=2e-3), (q2, q2_ref)

    print("KERNEL_OK")
</pallas_src>

<mosaic_0001>
module attributes {stable_mosaic.version = 11 : i64} {
  func.func @qnet_kernel(%arg0: i32, %arg1: memref<8x16xf32, #tpu.memory_space<vmem>>, %arg2: memref<8x8xf32, #tpu.memory_space<vmem>>, %arg3: memref<16x256xbf16, #tpu.memory_space<vmem>>, %arg4: memref<8x256xbf16, #tpu.memory_space<vmem>>, %arg5: memref<1x256xf32, #tpu.memory_space<vmem>>, %arg6: memref<256x256xbf16, #tpu.memory_space<vmem>>, %arg7: memref<1x256xf32, #tpu.memory_space<vmem>>, %arg8: memref<1x256xbf16, #tpu.memory_space<vmem>>, %arg9: memref<1x1xf32, #tpu.memory_space<smem>>, %arg10: memref<1x8xf32, #tpu.memory_space<vmem>>) attributes {dimension_semantics = [#tpu.dimension_semantics<parallel>], iteration_bounds = array<i64: 1>, scalar_prefetch = 0 : i64, scratch_operands = 0 : i64, tpu.core_type = #tpu.core_type<tc>, window_params = [{transform_indices = @transform_0, window_bounds = array<i64: 8, 16>}, {transform_indices = @transform_1, window_bounds = array<i64: 8, 8>}, {pipeline_mode = #tpu.pipeline_mode<synchronous>, transform_indices = @transform_2, window_bounds = array<i64: 16, 256>}, {pipeline_mode = #tpu.pipeline_mode<synchronous>, transform_indices = @transform_3, window_bounds = array<i64: 8, 256>}, {pipeline_mode = #tpu.pipeline_mode<synchronous>, transform_indices = @transform_4, window_bounds = array<i64: 1, 256>}, {pipeline_mode = #tpu.pipeline_mode<synchronous>, transform_indices = @transform_5, window_bounds = array<i64: 256, 256>}, {pipeline_mode = #tpu.pipeline_mode<synchronous>, transform_indices = @transform_6, window_bounds = array<i64: 1, 256>}, {pipeline_mode = #tpu.pipeline_mode<synchronous>, transform_indices = @transform_7, window_bounds = array<i64: 1, 256>}, {transform_indices = @transform_8, window_bounds = array<i64: 1, 1>}, {transform_indices = @transform_9, window_bounds = array<i64: 1, 8>}]} {
    %c0 = arith.constant 0 : index
    %c0_0 = arith.constant 0 : index
    %0 = vector.load %arg1[%c0, %c0_0] : memref<8x16xf32, #tpu.memory_space<vmem>>, vector<8x16xf32>
    %1 = arith.truncf %0 : vector<8x16xf32> to vector<8x16xbf16>
    %c0_1 = arith.constant 0 : index
    %c0_2 = arith.constant 0 : index
    %2 = vector.load %arg2[%c0_1, %c0_2] : memref<8x8xf32, #tpu.memory_space<vmem>>, vector<8x8xf32>
    %3 = arith.truncf %2 : vector<8x8xf32> to vector<8x8xbf16>
    %c0_3 = arith.constant 0 : index
    %c0_4 = arith.constant 0 : index
    %4 = vector.load %arg3[%c0_3, %c0_4] : memref<16x256xbf16, #tpu.memory_space<vmem>>, vector<16x256xbf16>
    %cst = arith.constant dense<0.000000e+00> : vector<8x256xf32>
    %5 = tpu.matmul %1, %4, %cst {dimension_numbers = #tpu.dot_dimension_numbers<[1], [0], [0], [1], [0, 0, 1, 1], [], []>} : vector<8x16xbf16>, vector<16x256xbf16>, vector<8x256xf32> -> vector<8x256xf32>
    %c0_5 = arith.constant 0 : index
    %c0_6 = arith.constant 0 : index
    %6 = vector.load %arg4[%c0_5, %c0_6] : memref<8x256xbf16, #tpu.memory_space<vmem>>, vector<8x256xbf16>
    %cst_7 = arith.constant dense<0.000000e+00> : vector<8x256xf32>
    %7 = tpu.matmul %3, %6, %cst_7 {dimension_numbers = #tpu.dot_dimension_numbers<[1], [0], [0], [1], [0, 0, 1, 1], [], []>} : vector<8x8xbf16>, vector<8x256xbf16>, vector<8x256xf32> -> vector<8x256xf32>
    %8 = arith.addf %5, %7 : vector<8x256xf32>
    %c0_8 = arith.constant 0 : index
    %c0_9 = arith.constant 0 : index
    %9 = vector.load %arg5[%c0_8, %c0_9] : memref<1x256xf32, #tpu.memory_space<vmem>>, vector<1x256xf32>
    %10 = vector.broadcast %9 : vector<1x256xf32> to vector<8x256xf32>
    %11 = arith.addf %8, %10 : vector<8x256xf32>
    %cst_10 = arith.constant 0.000000e+00 : f32
    %12 = vector.broadcast %cst_10 : f32 to vector<8x256xf32>
    %13 = arith.maximumf %11, %12 : vector<8x256xf32>
    %14 = arith.truncf %13 : vector<8x256xf32> to vector<8x256xbf16>
    %c0_11 = arith.constant 0 : index
    %c0_12 = arith.constant 0 : index
    %15 = vector.load %arg6[%c0_11, %c0_12] : memref<256x256xbf16, #tpu.memory_space<vmem>>, vector<256x256xbf16>
    %cst_13 = arith.constant dense<0.000000e+00> : vector<8x256xf32>
    %16 = tpu.matmul %14, %15, %cst_13 {dimension_numbers = #tpu.dot_dimension_numbers<[1], [0], [0], [1], [0, 0, 1, 1], [], []>} : vector<8x256xbf16>, vector<256x256xbf16>, vector<8x256xf32> -> vector<8x256xf32>
    %c0_14 = arith.constant 0 : index
    %c0_15 = arith.constant 0 : index
    %17 = vector.load %arg7[%c0_14, %c0_15] : memref<1x256xf32, #tpu.memory_space<vmem>>, vector<1x256xf32>
    %18 = vector.broadcast %17 : vector<1x256xf32> to vector<8x256xf32>
    %19 = arith.addf %16, %18 : vector<8x256xf32>
    %cst_16 = arith.constant 0.000000e+00 : f32
    %20 = vector.broadcast %cst_16 : f32 to vector<8x256xf32>
    %21 = arith.maximumf %19, %20 : vector<8x256xf32>
    %c0_17 = arith.constant 0 : index
    %c0_18 = arith.constant 0 : index
    %22 = vector.load %arg8[%c0_17, %c0_18] : memref<1x256xbf16, #tpu.memory_space<vmem>>, vector<1x256xbf16>
    %23 = arith.truncf %21 : vector<8x256xf32> to vector<8x256xbf16>
    %cst_19 = arith.constant dense<0.000000e+00> : vector<1x8xf32>
    %24 = tpu.matmul %22, %23, %cst_19 {dimension_numbers = #tpu.dot_dimension_numbers<[1], [1], [0], [0], [0, 0, 1, 0], [], []>} : vector<1x256xbf16>, vector<8x256xbf16>, vector<1x8xf32> -> vector<1x8xf32>
    %c0_20 = arith.constant 0 : index
    %c0_21 = arith.constant 0 : index
    %25 = memref.load %arg9[%c0_20, %c0_21] : memref<1x1xf32, #tpu.memory_space<smem>>
    %26 = vector.broadcast %25 : f32 to vector<1x8xf32>
    %27 = arith.addf %24, %26 : vector<1x8xf32>
    %c0_22 = arith.constant 0 : index
    %c0_23 = arith.constant 0 : index
    %28 = vector.load %arg10[%c0_22, %c0_23] : memref<1x8xf32, #tpu.memory_space<vmem>>, vector<1x8xf32>
    tpu.vector_store %arg10[%c0_22, %c0_23], %27 {strides = array<i32>} : memref<1x8xf32, #tpu.memory_space<vmem>>, vector<1x8xf32>,
    return
  }
  func.func @transform_0(%arg0: i32) -> (i32, i32) {
    %c0_i32 = arith.constant 0 : i32
    %c0_i32_0 = arith.constant 0 : i32
    return %arg0, %c0_i32 : i32, i32
  }
  func.func @transform_1(%arg0: i32) -> (i32, i32) {
    %c0_i32 = arith.constant 0 : i32
    %c0_i32_0 = arith.constant 0 : i32
    return %arg0, %c0_i32 : i32, i32
  }
  func.func @transform_2(%arg0: i32) -> (i32, i32) {
    %c0_i32 = arith.constant 0 : i32
    %c0_i32_0 = arith.constant 0 : i32
    %c0_i32_1 = arith.constant 0 : i32
    return %c0_i32, %c0_i32_0 : i32, i32
  }
  func.func @transform_3(%arg0: i32) -> (i32, i32) {
    %c0_i32 = arith.constant 0 : i32
    %c0_i32_0 = arith.constant 0 : i32
    %c0_i32_1 = arith.constant 0 : i32
    return %c0_i32, %c0_i32_0 : i32, i32
  }
  func.func @transform_4(%arg0: i32) -> (i32, i32) {
    %c0_i32 = arith.constant 0 : i32
    %c0_i32_0 = arith.constant 0 : i32
    %c0_i32_1 = arith.constant 0 : i32
    return %c0_i32, %c0_i32_0 : i32, i32
  }
  func.func @transform_5(%arg0: i32) -> (i32, i32) {
    %c0_i32 = arith.constant 0 : i32
    %c0_i32_0 = arith.constant 0 : i32
    %c0_i32_1 = arith.constant 0 : i32
    return %c0_i32, %c0_i32_0 : i32, i32
  }
  func.func @transform_6(%arg0: i32) -> (i32, i32) {
    %c0_i32 = arith.constant 0 : i32
    %c0_i32_0 = arith.constant 0 : i32
    %c0_i32_1 = arith.constant 0 : i32
    return %c0_i32, %c0_i32_0 : i32, i32
  }
  func.func @transform_7(%arg0: i32) -> (i32, i32) {
    %c0_i32 = arith.constant 0 : i32
    %c0_i32_0 = arith.constant 0 : i32
    %c0_i32_1 = arith.constant 0 : i32
    return %c0_i32, %c0_i32_0 : i32, i32
  }
  func.func @transform_8(%arg0: i32) -> (i32, i32) {
    %c0_i32 = arith.constant 0 : i32
    %c0_i32_0 = arith.constant 0 : i32
    %c0_i32_1 = arith.constant 0 : i32
    return %c0_i32, %c0_i32_0 : i32, i32
  }
  func.func @transform_9(%arg0: i32) -> (i32, i32) {
    %c0_i32 = arith.constant 0 : i32
    %c0_i32_0 = arith.constant 0 : i32
    return %c0_i32, %arg0 : i32, i32
  }
}

</mosaic_0001>

<bundles_post_ra>
// kernel: tpu_custom_call.1
= control target key start
LH: loop header
LB: loop body
LE: loop exit
PB: predicated region body
PF: predicated region fallthrough
CT: control target
= control target key end

     0   :  { %15 = vsyncpa [#allocation4], 0  ;;  %s913_s0 = inlined_call_operand.hbm [shape: f32[8,16], index: 0, kind: input, shape index: {}]   ;;  %s914_s1 = inlined_call_operand.hbm [shape: f32[8,8], index: 1, kind: input, shape index: {}]   ;;  %s915_s2 = inlined_call_operand.hbm [shape: bf16[16,256], index: 2, kind: input, shape index: {}]   ;;  %s916_s3 = inlined_call_operand.vmem [shape: bf16[8,256], index: 3, kind: input, shape index: {}]   ;;  %s917_s4 = inlined_call_operand.vmem [shape: f32[1,256], index: 4, kind: input, shape index: {}]   ;;  %s918_s5 = inlined_call_operand.hbm [shape: bf16[256,256], index: 5, kind: input, shape index: {}]   ;;  %s919_s6 = inlined_call_operand.vmem [shape: f32[1,256], index: 6, kind: input, shape index: {}]   ;;  %s920_s7 = inlined_call_operand.vmem [shape: bf16[1,256], index: 7, kind: input, shape index: {}]   ;;  %s921_s8 = inlined_call_operand.<no memory space> [shape: f32[1,1], index: 8, kind: input, shape index: {}]   ;;  %s922_s9 = inlined_call_operand.hbm [shape: f32[1,8], index: 9, kind: output, shape index: {}]  }
   0x1   :  { %16 = vsyncpa [#allocation7], 0 }
   0x2   :  { %17 = vsyncpa [#allocation10], 0 }
   0x3   :  { %18 = vsyncpa [#allocation5], 0  ;;  %s779_s30 = smov [#allocation6]   ;;  %s780_s11 = smov [#allocation3]  }
   0x4   :  { %s35_s10 = sshll.u32 %s779_s30, 4  ;;  %s25_s12 = sshll.u32 %s780_s11, 4  ;;  %s36_s10 = int_to_ptr.vmem [resolvable:$true] %s35_s10  ;;  %s26_s12 = int_to_ptr.vmem [resolvable:$true] %s25_s12 }
   0x5   :  { %s661_s15 = scalar_lea.hbm %s914_s1, 128 }
   0x6   :  { %p662_p0 = scmp.ne.s32.totalorder %s914_s1, %s661_s15  ;;  %p665_p1 = scmp.lt.u32.totalorder %s661_s15, %s914_s1 }
   0x8   :  { %p667_p2 = pnand %p665_p1, %p662_p0 }
   0xa   :  { %670 = shalt.err (!%p667_p2)
}
   0xb   :  { %s671_s20 = scalar_lea.vmem %s36_s10, 128  ;;  %p676_p4 = scmp.lt.s32.totalorder %s36_s10, %s36_s10 }
   0xc   :  { %p672_p3 = scmp.ne.s32.totalorder %s36_s10, %s671_s20  ;;  %p677_p5 = scmp.lt.s32.totalorder %s671_s20, %s671_s20 }
   0xe   :  { %p678_p6 = por %p677_p5, %p676_p4 }
  0x10   :  { %p679_p7 = pnand %p678_p6, %p672_p3 }
  0x12   :  { %682 = shalt.err (!%p679_p7)
}
  0x13   :  { %38 = dma.hbm_to_vmem [thread:$0]  %s914_s1, 128, %s36_s10, [#allocation7]  }
  0x14   :  { %s683_s25 = scalar_lea.hbm %s913_s0, 128 }
  0x15   :  { %p684_p8 = scmp.ne.s32.totalorder %s913_s0, %s683_s25  ;;  %p687_p9 = scmp.lt.u32.totalorder %s683_s25, %s913_s0 }
  0x17   :  { %p689_p10 = pnand %p687_p9, %p684_p8 }
  0x19   :  { %692 = shalt.err (!%p689_p10)
}
  0x1a   :  { %s693_s30 = scalar_lea.vmem %s26_s12, 128  ;;  %p698_p12 = scmp.lt.s32.totalorder %s26_s12, %s26_s12 }
  0x1b   :  { %p694_p11 = scmp.ne.s32.totalorder %s26_s12, %s693_s30  ;;  %p699_p13 = scmp.lt.s32.totalorder %s693_s30, %s693_s30 }
  0x1d   :  { %p700_p0 = por %p699_p13, %p698_p12 }
  0x1f   :  { %p701_p1 = pnand %p700_p0, %p694_p11 }
  0x21   :  { %704 = shalt.err (!%p701_p1)
}
  0x22   :  { %28 = dma.hbm_to_vmem [thread:$0]  %s913_s0, 128, %s26_s12, [#allocation4]  }
  0x23   :  { %s781_s11 = smov [#allocation8]   ;;  %s705_s16 = scalar_lea.hbm %s915_s2, 256 }
  0x24   :  { %s44_s13 = sshll.u32 %s781_s11, 4  ;;  %p706_p2 = scmp.ne.s32.totalorder %s915_s2, %s705_s16  ;;  %s45_s13 = int_to_ptr.vmem [resolvable:$true] %s44_s13 }
  0x25   :  { %p709_p3 = scmp.lt.u32.totalorder %s705_s16, %s915_s2 }
  0x27   :  { %p711_p4 = pnand %p709_p3, %p706_p2 }
  0x29   :  { %714 = shalt.err (!%p711_p4)
}
  0x2a   :  { %s715_s21 = scalar_lea.vmem %s45_s13, 256  ;;  %p720_p6 = scmp.lt.s32.totalorder %s45_s13, %s45_s13 }
  0x2b   :  { %p716_p5 = scmp.ne.s32.totalorder %s45_s13, %s715_s21  ;;  %p721_p7 = scmp.lt.s32.totalorder %s715_s21, %s715_s21 }
  0x2d   :  { %p722_p8 = por %p721_p7, %p720_p6 }
  0x2f   :  { %p723_p9 = pnand %p722_p8, %p716_p5 }
  0x31   :  { %726 = shalt.err (!%p723_p9)
}
  0x32   :  { %s782_s0 = smov 128   ;;  %s783_s12 = smov 8  }
  0x33   :  { %50 = dma.hbm_to_vmem [thread:$0]  %s915_s2, 256, %s45_s13, [#allocation7], %s782_s0, %s782_s0, %s783_s12  }
  0x34   :  { %s784_s24 = smov [#allocation9]   ;;  %s727_s28 = scalar_lea.hbm %s918_s5, 4096 }
  0x35   :  { %s60_s25 = sshll.u32 %s784_s24, 4  ;;  %p728_p10 = scmp.ne.s32.totalorder %s918_s5, %s727_s28  ;;  %s61_s25 = int_to_ptr.vmem [resolvable:$true] %s60_s25 }
  0x36   :  { %p731_p11 = scmp.lt.u32.totalorder %s727_s28, %s918_s5 }
  0x38   :  { %p733_p12 = pnand %p731_p11, %p728_p10 }
  0x3a   :  { %736 = shalt.err (!%p733_p12)
}
  0x3b   :  { %s737_s11 = scalar_lea.vmem %s61_s25, 4096  ;;  %p742_p0 = scmp.lt.s32.totalorder %s61_s25, %s61_s25 }
  0x3c   :  { %p738_p13 = scmp.ne.s32.totalorder %s61_s25, %s737_s11  ;;  %p743_p1 = scmp.lt.s32.totalorder %s737_s11, %s737_s11 }
  0x3e   :  { %p744_p2 = por %p743_p1, %p742_p0 }
  0x40   :  { %p745_p3 = pnand %p744_p2, %p738_p13 }
  0x42   :  { %748 = shalt.err (!%p745_p3)
}
  0x43   :  { %66 = dma.hbm_to_vmem [thread:$0]  %s918_s5, 4096, %s61_s25, [#allocation10], %s782_s0, %s782_s0, %s783_s12  }
  0x44   :  { %771 = dma.done.wait [#allocation4], 128  }
  0x45   :  { %772 = vsyncadd [#allocation4], 4294967168 }
  0x46   :  { %773 = dma.done.wait [#allocation7], 384  }
  0x47   :  { %774 = vsyncadd [#allocation7], 4294966912 }
  0x48   :  { %775 = dma.done.wait [#allocation10], 4096  }
  0x49   :  { %776 = vsyncadd [#allocation10], 4294963200  ;;  %v785_v0 = vmov 0   ;;  %v92_v1 = vld [vmem:[%s916_s3] sm:$0xff]  ;;  %vm102_vm0 = vcmask 1043456   ;;  %v88_v2 = vld [vmem:[#allocation6] sm:$0xff]  ;;  %v207_v43 = vlaneseq }
  0x4a   :  { %141 = vmatprep.mubr.bf16.mxu1 %v785_v0  ;;  %v560_v3 = vcombine.high %v92_v1, %v92_v1  ;;  %v559_v4 = vcombine.low %v92_v1, %v92_v1  ;;  %v612_v5 = vld [vmem:[#allocation8 + $0x4] ss:$8 sps:$4 sm:$0xff]   ;;  %v89_v7 = vpack.c.bf16 %v88_v2, %v88_v2  ;;  %v613_v8 = vld [vmem:[#allocation9 + $0x4] ss:$8 sps:$4 sm:$0xff]   ;;  %v615_v9 = vld [vmem:[#allocation9] ss:$8 sps:$4 sm:$0xff]  }
  0x4b   :  { %vm98_vm1 = vcmask 64512   ;;  %v610_v10 = vld [vmem:[#allocation8] ss:$8 sps:$4 sm:$0xff]   ;;  %v616_v11 = vld [vmem:[#allocation9 + $0x14] ss:$8 sps:$4 sm:$0xff]   ;;  %427 = vmatprep.subr.bf16.mxu0 %v613_v8  ;;  %v86_v14 = vld [vmem:[#allocation3] sm:$0xff] }
  0x4c   :  { %561 = vmatprep.subr.msk.bf16.mxu1 %vm102_vm0, %v560_v3  ;;  %v104_v6 = vsel %vm102_vm0, %v559_v4, 0  ;;  %428 = vmatpush1.bf16.msra.mxu0 %v615_v9  ;;  %v618_v12 = vld [vmem:[#allocation9 + $0x10] ss:$8 sps:$4 sm:$0xff]   ;;  %v619_v13 = vld [vmem:[#allocation9 + $0x24] ss:$8 sps:$4 sm:$0xff]   ;;  %v87_v16 = vpack.c.bf16 %v86_v14, %v86_v14  ;;  %vm160_vm2 = vcmask 130048  }
  0x4d   :  { %110 = vmatpush1.bf16.msra.mxu1 %v104_v6  ;;  %429 = vmatprep.subr.bf16.mxu0 %v616_v11  ;;  %v621_v15 = vld [vmem:[#allocation9 + $0x20] ss:$8 sps:$4 sm:$0xff]   ;;  %v622_v17 = vld [vmem:[#allocation9 + $0x34] ss:$8 sps:$4 sm:$0xff]   ;;  %v624_v18 = vld [vmem:[#allocation9 + $0x30] ss:$8 sps:$4 sm:$0xff]  }
  0x4e   :  { %164 = vmatprep.subr.bf16.mxu1 %v612_v5  ;;  %v625_v19 = vld [vmem:[#allocation9 + $0x44] ss:$8 sps:$4 sm:$0xff]   ;;  %v627_v20 = vld [vmem:[#allocation9 + $0x40] ss:$8 sps:$4 sm:$0xff]   ;;  %v628_v21 = vld [vmem:[#allocation9 + $0x54] ss:$8 sps:$4 sm:$0xff]  }
  0x4f   :  { %v630_v22 = vld [vmem:[#allocation9 + $0x50] ss:$8 sps:$4 sm:$0xff]   ;;  %v631_v23 = vld [vmem:[#allocation9 + $0x64] ss:$8 sps:$4 sm:$0xff]   ;;  %v633_v24 = vld [vmem:[#allocation9 + $0x60] ss:$8 sps:$4 sm:$0xff]  }
  0x50   :  { %562 = vmatmul.mubr.msk.bf16.vlgmr.msra.gmra.mrb[0].mxu1 %vm98_vm1, %v89_v7  ;;  %430 = vmatpush1.bf16.msra.mxu0 %v618_v12  ;;  %v634_v25 = vld [vmem:[#allocation9 + $0x74] ss:$8 sps:$4 sm:$0xff]   ;;  %v636_v26 = vld [vmem:[#allocation9 + $0x70] ss:$8 sps:$4 sm:$0xff]   ;;  %v637_v27 = vld [vmem:[#allocation9 + $0x84] ss:$8 sps:$4 sm:$0xff]  }
  0x51   :  { %165 = vmatpush1.bf16.msra.mxu1 %v610_v10  ;;  %196 = vmatprep.mubr.bf16.mxu1 %v785_v0  ;;  %v639_v28 = vld [vmem:[#allocation9 + $0x80] ss:$8 sps:$4 sm:$0xff]   ;;  %v640_v29 = vld [vmem:[#allocation9 + $0x94] ss:$8 sps:$4 sm:$0xff]   ;;  %v642_v30 = vld [vmem:[#allocation9 + $0x90] ss:$8 sps:$4 sm:$0xff]  }
  0x52   :  { %431 = vmatprep.subr.bf16.mxu0 %v619_v13  ;;  %v643_v31 = vld [vmem:[#allocation9 + $0xa4] ss:$8 sps:$4 sm:$0xff]   ;;  %v645_v32 = vld [vmem:[#allocation9 + $0xa0] ss:$8 sps:$4 sm:$0xff]   ;;  %v646_v33 = vld [vmem:[#allocation9 + $0xb4] ss:$8 sps:$4 sm:$0xff]  }
  0x53   :  { %v648_v34 = vld [vmem:[#allocation9 + $0xb0] ss:$8 sps:$4 sm:$0xff]   ;;  %v649_v35 = vld [vmem:[#allocation9 + $0xc4] ss:$8 sps:$4 sm:$0xff]   ;;  %v651_v36 = vld [vmem:[#allocation9 + $0xc0] ss:$8 sps:$4 sm:$0xff]  }
  0x54   :  { %432 = vmatpush1.bf16.msra.mxu0 %v621_v15  ;;  %v652_v37 = vld [vmem:[#allocation9 + $0xd4] ss:$8 sps:$4 sm:$0xff]   ;;  %v654_v38 = vld [vmem:[#allocation9 + $0xd0] ss:$8 sps:$4 sm:$0xff]   ;;  %v655_v39 = vld [vmem:[#allocation9 + $0xe4] ss:$8 sps:$4 sm:$0xff]  }
  0x55   :  { %433 = vmatprep.subr.bf16.mxu0 %v622_v17  ;;  %v657_v40 = vld [vmem:[#allocation9 + $0xe0] ss:$8 sps:$4 sm:$0xff]   ;;  %v658_v41 = vld [vmem:[#allocation9 + $0xf4] ss:$8 sps:$4 sm:$0xff]   ;;  %v660_v42 = vld [vmem:[#allocation9 + $0xf0] ss:$8 sps:$4 sm:$0xff]  }
  0x56   :  { %v208_v44 = vshrl.u32 %v207_v43, 7  ;;  %v205_v50 = vld [vmem:[%s917_s4] sm:$0x3]  ;;  %v786_v2 = vmov 1966171168   ;;  %vm540_vm3 = vcmask 57344  }
  0x57   :  { %v485_v3 = vunpack.c.l.s4 %v786_v2  ;;  %v598_v4 = vld.sshfl [vmem:[%s920_s7] sm:$0x11 pattern:$0x75316420] }
  0x58   :  { %565 = vmatmul.mubr.msk.bf16.vlgmr.msra.gmra.mrb[4].mxu1 %vm160_vm2, %v87_v16  ;;  %434 = vmatpush1.bf16.msra.mxu0 %v624_v18  ;;  %v209_v49 = vsub.s32 0, %v208_v44  ;;  %v213_v51 = vsub.s32 1, %v208_v44  ;;  %v483_v6 = vcombine.high %v598_v4, %v598_v4  ;;  %v255_v10 = vld [vmem:[%s919_s6] sm:$0x3]  ;;  %s787_s6 = smov [#allocation11]  }
  0x59   :  { %435 = vmatprep.subr.bf16.mxu0 %v625_v19  ;;  %v486_v5 = vunpack.c.0.s8 %v485_v3  ;;  %s548_s20 = sshll.u32 %s787_s6, 4  ;;  %s549_s20 = int_to_ptr.vmem [resolvable:$true] %s548_s20 }
  0x5a   :  { %v210_v52 = vrot.slane %v205_v50, %v209_v49  ;;  %v214_v54 = vrot.slane %v205_v50, %v213_v51  ;;  %v260_v11 = vrot.slane %v255_v10, %v209_v49  ;;  %v264_v12 = vrot.slane %v255_v10, %v213_v51  ;;  %s749_s21 = scalar_lea.vmem %s549_s20, 16  ;;  %s753_s0 = scalar_lea.vmem %s549_s20, 32 }
  0x5b   :  { %v489_v7 = vsub.s32 %v486_v5, %v208_v44  ;;  %p750_p4 = scmp.ne.s32.totalorder %s549_s20, %s749_s21  ;;  %p754_p5 = scmp.lt.s32.totalorder %s549_s20, %s549_s20 }
  0x5c   :  { %436 = vmatpush1.bf16.msra.mxu0 %v627_v20  ;;  %p755_p6 = scmp.lt.s32.totalorder %s753_s0, %s749_s21 }
  0x5d   :  { %437 = vmatprep.subr.bf16.mxu0 %v628_v21  ;;  %v497_v8 = vrot.slane %v483_v6, %v489_v7  ;;  %v490_v9 = vrot.slane %v598_v4, %v489_v7 }
  0x5e   :  { %p756_p7 = por %p755_p6, %p754_p5 }
  0x5f   :  { %532 = vmatprep.mubr.bf16.mxu1 %v497_v8 }
  0x60   :  { %438 = vmatpush1.bf16.msra.mxu0 %v630_v22  ;;  %p757_p8 = pnand %p756_p7, %p750_p4 }
  0x61   :  { %439 = vmatprep.subr.bf16.mxu0 %v631_v23  ;;  %v474_v23 = vstv %s921_s8 }
  0x64   :  { %440 = vmatpush1.bf16.msra.mxu0 %v633_v24 }
  0x65   :  { %441 = vmatprep.subr.bf16.mxu0 %v634_v25 }
  0x68   :  { %442 = vmatpush1.bf16.msra.mxu0 %v636_v26 }
  0x69   :  { %443 = vmatprep.subr.bf16.mxu0 %v637_v27 }
  0x6c   :  { %444 = vmatpush1.bf16.msra.mxu0 %v639_v28 }
  0x6d   :  { %445 = vmatprep.subr.bf16.mxu0 %v640_v29 }
  0x70   :  { %446 = vmatpush1.bf16.msra.mxu0 %v642_v30 }
  0x71   :  { %447 = vmatprep.subr.bf16.mxu0 %v643_v31 }
  0x74   :  { %448 = vmatpush1.bf16.msra.mxu0 %v645_v32 }
  0x75   :  { %449 = vmatprep.subr.bf16.mxu0 %v646_v33 }
  0x78   :  { %450 = vmatpush1.bf16.msra.mxu0 %v648_v34 }
  0x79   :  { %451 = vmatprep.subr.bf16.mxu0 %v649_v35 }
  0x7c   :  { %452 = vmatpush1.bf16.msra.mxu0 %v651_v36 }
  0x7d   :  { %453 = vmatprep.subr.bf16.mxu0 %v652_v37 }
  0x80   :  { %454 = vmatpush1.bf16.msra.mxu0 %v654_v38 }
  0x81   :  { %455 = vmatprep.subr.bf16.mxu0 %v655_v39 }
  0x84   :  { %456 = vmatpush1.bf16.msra.mxu0 %v657_v40 }
  0x85   :  { %457 = vmatprep.subr.bf16.mxu0 %v658_v41 }
  0x88   :  { %458 = vmatpush1.bf16.msra.mxu0 %v660_v42 }
 0x123   :  { %v143_v45 = vpop.f32.mrb[0].mxu1 }
 0x124   :  { %v145_v46 = vpop.f32.mrb[1].mxu1 }
 0x125   :  { %v147_v47 = vpop.f32.mrb[2].mxu1 }
 0x126   :  { %v148_v48 = vpop.f32.mrb[3].mxu1 }
 0x12b   :  { %v198_v53 = vpop.f32.mrb[4].mxu1 }
 0x12c   :  { %v199_v55 = vadd.f32 %v198_v53, %v143_v45  ;;  %v200_v56 = vpop.f32.mrb[5].mxu1 }
 0x12d   :  { %v201_v57 = vadd.f32 %v200_v56, %v145_v46  ;;  %v202_v58 = vpop.f32.mrb[6].mxu1 }
 0x12e   :  { %v217_v59 = vadd.f32 %v210_v52, %v199_v55  ;;  %v203_v60 = vpop.f32.mrb[7].mxu1 }
 0x12f   :  { %v218_v61 = vadd.f32 %v214_v54, %v201_v57 }
 0x130   :  { %v219_v62 = vmax.f32 %v217_v59, 0.0 }
 0x131   :  { %v220_v63 = vmax.f32 %v218_v61, 0.0 }
 0x132   :  { %v221_v1 = vpack.c.bf16 %v219_v62, %v219_v62 }
 0x133   :  { %v222_v0 = vpack.c.bf16 %v220_v63, %v220_v63 }
 0x135   :  { %459 = vmatprep.mubr.bf16.mxu0 %v222_v0 }
 0x136   :  { %460 = vmatmul.mubr.bf16.vlgmr.msra.gmra.mrb[0].mxu0 %v221_v1 }
 0x209   :  { %v461_v13 = vpop.f32.mrb[0].mxu0 }
 0x20a   :  { %v462_v14 = vadd.f32 %v461_v13, %v260_v11  ;;  %v463_v15 = vpop.f32.mrb[1].mxu0 }
 0x20b   :  { %v464_v16 = vadd.f32 %v463_v15, %v264_v12  ;;  %v465_v17 = vpop.f32.mrb[2].mxu0 }
 0x20c   :  { %v468_v18 = vmax.f32 %v462_v14, 0.0  ;;  %v466_v19 = vpop.f32.mrb[3].mxu0 }
 0x20d   :  { %v469_v20 = vmax.f32 %v464_v16, 0.0 }
 0x20e   :  { %v471_v22 = vpack.c.bf16 %v468_v18, %v468_v18 }
 0x20f   :  { %v472_v21 = vpack.c.bf16 %v469_v20, %v469_v20 }
 0x211   :  { %500 = vmatprep.subr.bf16.mxu1 %v472_v21 }
 0x212   :  { %501 = vmatpush1.bf16.xpose.msra.mxu1 %v471_v22 }
 0x219   :  { %533 = vmatmul.mubr.bf16.vlgmr.msra.gmra.mrb[8].mxu1 %v490_v9 }
 0x2ec   :  { %v534_v24 = vpop.f32.mrb[8].mxu1 }
 0x2ed   :  { %v535_v25 = vadd.f32 %v534_v24, %v474_v23  ;;  %v536_v26 = vpop.f32.mrb[9].mxu1 }
 0x2ee   :  { %v537_v27 = vpop.f32.mrb[10].mxu1 }
 0x2ef   :  { %v538_v28 = vpop.f32.mrb[11].mxu1  ;;  %541 = vst.msk [vmem:[#allocation11] sm:$0x1] %vm540_vm3, %v535_v25 }
 0x2f0   :  { %760 = shalt.err (!%p757_p8)
}
 0x2f1   :  { %s761_s22 = scalar_lea.hbm %s922_s9, 16 }
 0x2f2   :  { %p762_p9 = scmp.ne.s32.totalorder %s922_s9, %s761_s22  ;;  %p765_p10 = scmp.lt.u32.totalorder %s761_s22, %s922_s9 }
 0x2f4   :  { %p767_p11 = pnand %p765_p10, %p762_p9 }
 0x2f6   :  { %770 = shalt.err (!%p767_p11)
}
 0x2f7   :  { %551 = dma.vmem_to_hbm [thread:$0]  %s549_s20, 16, %s922_s9, [#allocation5]  }
 0x2f8   :  { %777 = dma.done.wait [#allocation5], 16  }
 0x2f9   :  { %778 = vsyncadd [#allocation5], 4294967280 }
 0x2fa   :  { %555 = vsyncpa [#allocation4], 1 }
 0x2fb   :  { %556 = vsyncpa [#allocation7], 1 }
 0x2fc   :  { %557 = vsyncpa [#allocation10], 1 }
 0x2fd   :  { %558 = vsyncpa [#allocation5], 1 }

</bundles_post_ra>
